<compile_context>
chip_gen: v5e
topology: v5e:2x2
jax: 0.10.0
libtpu: 0.0.40
codegen_flags: <defaults>
</compile_context>

<pallas_src>
import functools
from typing import NamedTuple

import jax
import jax.numpy as jnp
from jax import lax
from jax.experimental import pallas as pl
from jax.experimental.pallas import tpu as pltpu

_LANE = 128
_SUBLANE = 8


def _round_up(x, m):
    return ((x + m - 1) // m) * m


def _device_kind():
    try:
        return jax.devices()[0].device_kind.lower()
    except Exception:
        return ""


def _is_v7x(kind):
    return ("v7" in kind) or ("7x" in kind)


def _has_bf16_vpu(kind):
    # v6e / v7x have a bf16 VPU + EUP path; v5e (and older) do not.
    return ("v6" in kind) or _is_v7x(kind)


def _vmem_capacity_bytes(kind):
    try:
        return int(pltpu.get_tpu_info().vmem_capacity_bytes)
    except Exception:
        return (64 << 20) if _is_v7x(kind) else (128 << 20)


# --------------------------------------------------------------------------
# Kernel
# --------------------------------------------------------------------------
def _mlp_kernel(y_ref, w_in_ref, b_in_ref, w_hid_ref, b_hid_ref,
                w_out_ref, b_out_ref, o_ref, *, nlayer, act_dtype):
    """Linear -> [Tanh -> Linear]*nlayer -> Tanh -> Linear on one lane-padded
    batch tile, entirely in VMEM.  MXU matmuls accumulate in f32; tanh runs in
    `act_dtype` (bf16 on v6e/v7x bf16 path, f32 otherwise)."""
    w_dtype = w_in_ref.dtype
    y = y_ref[...].astype(w_dtype)

    # Input layer: (TB, Dp) @ (Dp, Hp) + (1, Hp)
    h = jnp.dot(y, w_in_ref[...], preferred_element_type=jnp.float32) + b_in_ref[...]

    def hidden(h, w, b):
        h = jnp.tanh(h.astype(act_dtype))                      # EUP
        return jnp.dot(h.astype(w.dtype), w,
                       preferred_element_type=jnp.float32) + b

    if nlayer <= 4:
        # Shallow net: static unroll keeps things simple, no spill pressure.
        for l in range(nlayer):
            h = hidden(h, w_hid_ref[l], b_hid_ref[l])
    elif nlayer > 0:
        # Deep net: rolled loop with a small bounded unroll keeps vreg live
        # ranges bounded (a full unroll would not) while retaining some LLO
        # scheduling visibility.  Dynamic first-axis ref indexing is cheap.
        def body(l, h):
            return hidden(h, w_hid_ref[l], b_hid_ref[l])
        h = lax.fori_loop(0, nlayer, body, h, unroll=2)

    # Output layer: (TB, Hp) @ (Hp, Dp) + (1, Dp)
    h = jnp.tanh(h.astype(act_dtype))
    out = jnp.dot(h.astype(w_dtype), w_out_ref[...],
                  preferred_element_type=jnp.float32) + b_out_ref[...]
    o_ref[...] = out.astype(o_ref.dtype)


# --------------------------------------------------------------------------
# One-time parameter preparation (padding hoisted out of the per-call path)
# --------------------------------------------------------------------------
class PreparedParams(NamedTuple):
    w_in: jax.Array      # (Dp, Hp)       weight dtype
    b_in: jax.Array      # (1, Hp)        f32
    w_hid: jax.Array     # (L_blk, Hp, Hp) weight dtype
    b_hid: jax.Array     # (L_blk, 1, Hp) f32
    w_out: jax.Array     # (Hp, Dp)       weight dtype
    b_out: jax.Array     # (1, Dp)        f32
    dim: int
    nunit: int
    nlayer: int


def _pad2(a, rows, cols, dtype):
    if a.shape == (rows, cols) and a.dtype == jnp.dtype(dtype):
        return a
    out = jnp.zeros((rows, cols), dtype)
    return out.at[:a.shape[0], :a.shape[1]].set(a.astype(dtype))


def prepare_params(params, *, weight_dtype=jnp.bfloat16):
    """Pad weights/biases to the 128-lane width ONCE (call at module init /
    solver setup, not per forward).  Zero padding is exact: tanh(0)=0 so the
    padded lanes stay zero through the whole net."""
    w_in, b_in, w_hid, b_hid, w_out, b_out = params
    D, H = w_in.shape
    L = w_hid.shape[0]
    L_blk = max(L, 1)
    wdt = jnp.dtype(weight_dtype)
    f32 = jnp.float32

    Dp = _round_up(D, _LANE)
    Hp = _round_up(H, _LANE)

    w_hid_p = jnp.zeros((L_blk, Hp, Hp), wdt).at[:L, :H, :H].set(w_hid.astype(wdt))
    b_hid_p = jnp.zeros((L_blk, 1, Hp), f32).at[:L, :, :H].set(b_hid.astype(f32))

    return PreparedParams(
        _pad2(w_in, Dp, Hp, wdt), _pad2(b_in, 1, Hp, f32),
        w_hid_p, b_hid_p,
        _pad2(w_out, Hp, Dp, wdt), _pad2(b_out, 1, Dp, f32),
        D, H, L)


# --------------------------------------------------------------------------
# Forward
# --------------------------------------------------------------------------
def odefunc_forward(t, y, params, *, tile_b=512, weight_dtype=jnp.bfloat16,
                    single_buffer_weights=None, vmem_budget_bytes=None):
    """Pallas implementation of ODEfunc.forward(t, y).  `t` is unused (matches
    the PyTorch module).  `params` may be a PreparedParams (preferred: prepare
    once, reuse across solver steps) or a raw param tuple."""
    del t
    if not isinstance(params, PreparedParams):
        # Callers driving an ODE solver should call prepare_params() once.
        params = prepare_params(params, weight_dtype=weight_dtype)

    D, H, L = params.dim, params.nunit, params.nlayer
    L_blk, Hp, _ = params.w_hid.shape
    Dp = params.w_in.shape[0]
    wdt = params.w_in.dtype

    kind = _device_kind()
    is_v7x = _is_v7x(kind)
    cap = _vmem_capacity_bytes(kind)
    if vmem_budget_bytes is None:
        vmem_budget_bytes = int(0.6 * cap)

    B, _ = y.shape
    Bp = _round_up(B, _SUBLANE)
    y_bytes = jnp.dtype(y.dtype).itemsize

    # ---- resident weight/bias footprint (per buffered copy) -----------------
    weight_bytes_1 = wdt.itemsize * (Dp * Hp + L_blk * Hp * Hp + Hp * Dp)
    bias_bytes_1 = 4 * _SUBLANE * ((1 + L_blk) * Hp + Dp)   # (1,N) pads to 8 sublanes
    if single_buffer_weights is None:
        # Single-buffering the constant-index weight blocks only pays when
        # they are sizeable; small nets stay on the plain (default) path.
        single_buffer_weights = (weight_bytes_1 + bias_bytes_1) > (4 << 20)
    n_wbuf = 1 if single_buffer_weights else 2

    # ---- batch tile size -----------------------------------------------------
    # Per row: double-buffered in + out tiles, ~3 f32 intermediates.
    per_row = 2 * 2 * Dp * y_bytes + 3 * max(Dp, Hp) * 4
    avail = vmem_budget_bytes - n_wbuf * (weight_bytes_1 + bias_bytes_1)
    tb_cap = max(_SUBLANE, (max(avail, 0) // per_row) // _SUBLANE * _SUBLANE)
    tb = max(_SUBLANE, min(tile_b, Bp, tb_cap) // _SUBLANE * _SUBLANE)

    # Split a single tile across the grid only on v7x (2 TensorCores), and only
    # when each half still gives the MXU >=128 rows of M.  v5e/v6e have one TC,
    # so splitting just adds per-step overhead.
    if is_v7x and Bp >= 2 * _LANE and Bp // tb < 2:
        tb = max(_LANE, _round_up(pl.cdiv(Bp, 2), _SUBLANE))

    Bg = _round_up(Bp, tb)
    grid = (Bg // tb,)

    # Explicit VMEM limit from actual buffer counts + headroom, capped at 80%
    # of the physical per-core capacity (v7x only has 64 MiB).
    est_vmem = n_wbuf * (weight_bytes_1 + bias_bytes_1) + tb * per_row + (4 << 20)
    vmem_limit = int(min(max(est_vmem, 16 << 20), int(0.8 * cap)))
    # TODO(synk): for very large L*Hp*Hp stacks that exceed this budget on v7x,
    # stream 1-2 hidden layers at a time over an extra "arbitrary" grid axis
    # (h kept in VMEM scratch) instead of holding all layers resident.

    # tanh in bf16 on v6e/v7x when already on the bf16 weight path; f32 on v5e
    # (no bf16 EUP/VPU) and on the exact f32-weight path.
    act_dtype = (jnp.bfloat16
                 if (_has_bf16_vpu(kind) and wdt == jnp.bfloat16)
                 else jnp.float32)

    # Per-call padding is only on y (batch-sized); weights were padded once.
    y_p = y
    if (B, D) != (Bg, Dp):
        y_p = jnp.zeros((Bg, Dp), y.dtype).at[:B, :D].set(y)

    def _weight_spec(shape):
        idx = lambda i, _n=len(shape): (0,) * _n
        if single_buffer_weights:
            try:
                # Constant index_map -> block never changes; one resident copy
                # halves the weight footprint (matters on v7x's 64 MiB VMEM).
                return pl.BlockSpec(shape, idx, pipeline_mode=pl.Buffered(1))
            except TypeError:
                pass   # Pallas build without pipeline_mode/Buffered knob.
        return pl.BlockSpec(shape, idx)

    in_specs = [pl.BlockSpec((tb, Dp), lambda i: (i, 0)),
                _weight_spec((Dp, Hp)), _weight_spec((1, Hp)),
                _weight_spec((L_blk, Hp, Hp)), _weight_spec((L_blk, 1, Hp)),
                _weight_spec((Hp, Dp)), _weight_spec((1, Dp))]

    kernel = functools.partial(_mlp_kernel, nlayer=L, act_dtype=act_dtype)

    # TODO(synk): when driven by an ODE solver (hundreds of evaluations per
    # solve), fuse the solver-step loop into a single pallas_call (leading
    # "arbitrary" step axis or in-kernel pl.loop with the step update) so the
    # weight HBM->VMEM DMA and dispatch are paid once per solve, not per step.
    out_p = pl.pallas_call(
        kernel,
        out_shape=jax.ShapeDtypeStruct((Bg, Dp), y.dtype),
        grid_spec=pltpu.PrefetchScalarGridSpec(
            num_scalar_prefetch=0,
            grid=grid,
            in_specs=in_specs,
            out_specs=pl.BlockSpec((tb, Dp), lambda i: (i, 0)),
        ),
        compiler_params=pltpu.CompilerParams(
            dimension_semantics=("parallel",),
            vmem_limit_bytes=vmem_limit),
    )(y_p, params.w_in, params.b_in, params.w_hid, params.b_hid,
      params.w_out, params.b_out)

    return out_p[:B, :D]


# --------------------------------------------------------------------------
# Init + reference + self-test
# --------------------------------------------------------------------------
def init_params(key, dim, nlayer, nunit, dtype=jnp.float32):
    """PyTorch nn.Linear-style init (uniform(-1/sqrt(fan_in), +1/sqrt(fan_in))).
    Weights are returned already transposed to (in, out) for the kernel."""
    def linear(k, fan_in, fan_out):
        kw, kb = jax.random.split(k)
        bound = 1.0 / jnp.sqrt(fan_in)
        w = jax.random.uniform(kw, (fan_in, fan_out), dtype, -bound, bound)
        b = jax.random.uniform(kb, (1, fan_out), dtype, -bound, bound)
        return w, b

    keys = jax.random.split(key, nlayer + 2)
    w_in, b_in = linear(keys[0], dim, nunit)

    w_hid_list, b_hid_list = [], []
    for l in range(nlayer):
        w, b = linear(keys[1 + l], nunit, nunit)
        w_hid_list.append(w)
        b_hid_list.append(b[None])                  # (1, 1, H)
    w_hid = jnp.stack(w_hid_list, axis=0)           # (L, H, H)
    b_hid = jnp.concatenate(b_hid_list, axis=0)     # (L, 1, H)

    w_out, b_out = linear(keys[-1], nunit, dim)
    return (w_in, b_in, w_hid, b_hid, w_out, b_out)


def odefunc_reference(y, params):
    """Pure-JAX reference for validation."""
    w_in, b_in, w_hid, b_hid, w_out, b_out = params
    h = y @ w_in + b_in[0]
    for l in range(w_hid.shape[0]):
        h = jnp.tanh(h)
        h = h @ w_hid[l] + b_hid[l, 0]
    h = jnp.tanh(h)
    return h @ w_out + b_out[0]


if __name__ == "__main__":
    # Small shapes: batch=8, dim=4, nlayer=2, nunit=32
    B, DIM, NLAYER, NUNIT = 8, 4, 2, 32

    key = jax.random.PRNGKey(0)
    k_param, k_param_deep, k_y, k_y_big = jax.random.split(key, 4)

    params = init_params(k_param, DIM, NLAYER, NUNIT)
    y = jax.random.normal(k_y, (B, DIM), jnp.float32)
    t = jnp.float32(0.0)          # unused, matches forward(t, y) signature

    ref = odefunc_reference(y, params)

    # Padding hoisted: prepare once, reuse across every forward call.
    prepared_f32 = prepare_params(params, weight_dtype=jnp.float32)
    prepared_bf16 = prepare_params(params, weight_dtype=jnp.bfloat16)

    # 1) exact-precision path (f32 weights, f32 tanh) vs pure-JAX reference.
    out_f32 = jax.block_until_ready(odefunc_forward(t, y, prepared_f32))
    assert out_f32.shape == (B, DIM)
    assert jnp.allclose(out_f32, ref, atol=1e-5, rtol=1e-5), "f32 mismatch"

    # 2) default fast path (bf16 weights, f32 MXU accumulate, bf16 tanh on
    #    v6e/v7x) — looser tolerance.
    out_bf16 = jax.block_until_ready(odefunc_forward(t, y, prepared_bf16))
    assert out_bf16.shape == (B, DIM)
    assert jnp.allclose(out_bf16, ref, atol=5e-2, rtol=5e-2), "bf16 mismatch"

    # 3) multi-step batch grid (non-tile-aligned B, explicit small tile so the
    #    grid has several steps regardless of generation).
    B2 = 300
    y2 = jax.random.normal(k_y_big, (B2, DIM), jnp.float32)
    out2 = jax.block_until_ready(odefunc_forward(t, y2, prepared_f32, tile_b=128))
    ref2 = odefunc_reference(y2, params)
    assert out2.shape == (B2, DIM)
    assert jnp.allclose(out2, ref2, atol=1e-5, rtol=1e-5), "batched mismatch"

    # 4) deep net exercises the rolled fori_loop hidden-layer path (nlayer > 4).
    params_deep = init_params(k_param_deep, DIM, 6, NUNIT)
    prepared_deep = prepare_params(params_deep, weight_dtype=jnp.float32)
    out_deep = jax.block_until_ready(odefunc_forward(t, y, prepared_deep))
    ref_deep = odefunc_reference(y, params_deep)
    assert jnp.allclose(out_deep, ref_deep, atol=1e-4, rtol=1e-4), "deep mismatch"

    print("KERNEL_OK")
</pallas_src>

<mosaic_0001>
module attributes {stable_mosaic.version = 11 : i64} {
  func.func @_mlp_kernel(%arg0: i32, %arg1: memref<8x128xf32, #tpu.memory_space<vmem>>, %arg2: memref<128x128xf32, #tpu.memory_space<vmem>>, %arg3: memref<1x128xf32, #tpu.memory_space<vmem>>, %arg4: memref<2x128x128xf32, #tpu.memory_space<vmem>>, %arg5: memref<2x1x128xf32, #tpu.memory_space<vmem>>, %arg6: memref<128x128xf32, #tpu.memory_space<vmem>>, %arg7: memref<1x128xf32, #tpu.memory_space<vmem>>, %arg8: memref<8x128xf32, #tpu.memory_space<vmem>>) attributes {dimension_semantics = [#tpu.dimension_semantics<parallel>], iteration_bounds = array<i64: 1>, scalar_prefetch = 0 : i64, scratch_operands = 0 : i64, tpu.core_type = #tpu.core_type<tc>, window_params = [{transform_indices = @transform_0, window_bounds = array<i64: 8, 128>}, {pipeline_mode = #tpu.pipeline_mode<synchronous>, transform_indices = @transform_1, window_bounds = array<i64: 128, 128>}, {pipeline_mode = #tpu.pipeline_mode<synchronous>, transform_indices = @transform_2, window_bounds = array<i64: 1, 128>}, {pipeline_mode = #tpu.pipeline_mode<synchronous>, transform_indices = @transform_3, window_bounds = array<i64: 2, 128, 128>}, {pipeline_mode = #tpu.pipeline_mode<synchronous>, transform_indices = @transform_4, window_bounds = array<i64: 2, 1, 128>}, {pipeline_mode = #tpu.pipeline_mode<synchronous>, transform_indices = @transform_5, window_bounds = array<i64: 128, 128>}, {pipeline_mode = #tpu.pipeline_mode<synchronous>, transform_indices = @transform_6, window_bounds = array<i64: 1, 128>}, {transform_indices = @transform_7, window_bounds = array<i64: 8, 128>}]} {
    %c0 = arith.constant 0 : index
    %c0_0 = arith.constant 0 : index
    %0 = vector.load %arg1[%c0, %c0_0] : memref<8x128xf32, #tpu.memory_space<vmem>>, vector<8x128xf32>
    %c0_1 = arith.constant 0 : index
    %c0_2 = arith.constant 0 : index
    %1 = vector.load %arg2[%c0_1, %c0_2] : memref<128x128xf32, #tpu.memory_space<vmem>>, vector<128x128xf32>
    %cst = arith.constant dense<0.000000e+00> : vector<8x128xf32>
    %2 = tpu.matmul %0, %1, %cst {dimension_numbers = #tpu.dot_dimension_numbers<[1], [0], [0], [1], [0, 0, 1, 1], [], []>} : vector<8x128xf32>, vector<128x128xf32>, vector<8x128xf32> -> vector<8x128xf32>
    %c0_3 = arith.constant 0 : index
    %c0_4 = arith.constant 0 : index
    %3 = vector.load %arg3[%c0_3, %c0_4] : memref<1x128xf32, #tpu.memory_space<vmem>>, vector<1x128xf32>
    %4 = vector.broadcast %3 : vector<1x128xf32> to vector<8x128xf32>
    %5 = arith.addf %2, %4 : vector<8x128xf32>
    %c0_5 = arith.constant 0 : index
    %c0_6 = arith.constant 0 : index
    %c0_7 = arith.constant 0 : index
    %6 = vector.load %arg4[%c0_5, %c0_6, %c0_7] : memref<2x128x128xf32, #tpu.memory_space<vmem>>, vector<1x128x128xf32>
    %7 = vector.shape_cast %6 : vector<1x128x128xf32> to vector<128x128xf32>
    %c0_8 = arith.constant 0 : index
    %c0_9 = arith.constant 0 : index
    %c0_10 = arith.constant 0 : index
    %8 = vector.load %arg5[%c0_8, %c0_9, %c0_10] : memref<2x1x128xf32, #tpu.memory_space<vmem>>, vector<1x1x128xf32>
    %9 = vector.shape_cast %8 : vector<1x1x128xf32> to vector<1x128xf32>
    %10 = math.tanh %5 : vector<8x128xf32>
    %cst_11 = arith.constant dense<0.000000e+00> : vector<8x128xf32>
    %11 = tpu.matmul %10, %7, %cst_11 {dimension_numbers = #tpu.dot_dimension_numbers<[1], [0], [0], [1], [0, 0, 1, 1], [], []>} : vector<8x128xf32>, vector<128x128xf32>, vector<8x128xf32> -> vector<8x128xf32>
    %12 = vector.broadcast %9 : vector<1x128xf32> to vector<8x128xf32>
    %13 = arith.addf %11, %12 : vector<8x128xf32>
    %c1 = arith.constant 1 : index
    %c0_12 = arith.constant 0 : index
    %c0_13 = arith.constant 0 : index
    %14 = vector.load %arg4[%c1, %c0_12, %c0_13] : memref<2x128x128xf32, #tpu.memory_space<vmem>>, vector<1x128x128xf32>
    %15 = vector.shape_cast %14 : vector<1x128x128xf32> to vector<128x128xf32>
    %c1_14 = arith.constant 1 : index
    %c0_15 = arith.constant 0 : index
    %c0_16 = arith.constant 0 : index
    %16 = vector.load %arg5[%c1_14, %c0_15, %c0_16] : memref<2x1x128xf32, #tpu.memory_space<vmem>>, vector<1x1x128xf32>
    %17 = vector.shape_cast %16 : vector<1x1x128xf32> to vector<1x128xf32>
    %18 = math.tanh %13 : vector<8x128xf32>
    %cst_17 = arith.constant dense<0.000000e+00> : vector<8x128xf32>
    %19 = tpu.matmul %18, %15, %cst_17 {dimension_numbers = #tpu.dot_dimension_numbers<[1], [0], [0], [1], [0, 0, 1, 1], [], []>} : vector<8x128xf32>, vector<128x128xf32>, vector<8x128xf32> -> vector<8x128xf32>
    %20 = vector.broadcast %17 : vector<1x128xf32> to vector<8x128xf32>
    %21 = arith.addf %19, %20 : vector<8x128xf32>
    %22 = math.tanh %21 : vector<8x128xf32>
    %c0_18 = arith.constant 0 : index
    %c0_19 = arith.constant 0 : index
    %23 = vector.load %arg6[%c0_18, %c0_19] : memref<128x128xf32, #tpu.memory_space<vmem>>, vector<128x128xf32>
    %cst_20 = arith.constant dense<0.000000e+00> : vector<8x128xf32>
    %24 = tpu.matmul %22, %23, %cst_20 {dimension_numbers = #tpu.dot_dimension_numbers<[1], [0], [0], [1], [0, 0, 1, 1], [], []>} : vector<8x128xf32>, vector<128x128xf32>, vector<8x128xf32> -> vector<8x128xf32>
    %c0_21 = arith.constant 0 : index
    %c0_22 = arith.constant 0 : index
    %25 = vector.load %arg7[%c0_21, %c0_22] : memref<1x128xf32, #tpu.memory_space<vmem>>, vector<1x128xf32>
    %26 = vector.broadcast %25 : vector<1x128xf32> to vector<8x128xf32>
    %27 = arith.addf %24, %26 : vector<8x128xf32>
    %c0_23 = arith.constant 0 : index
    %c0_24 = arith.constant 0 : index
    %28 = vector.load %arg8[%c0_23, %c0_24] : memref<8x128xf32, #tpu.memory_space<vmem>>, vector<8x128xf32>
    tpu.vector_store %arg8[%c0_23, %c0_24], %27 {strides = array<i32>} : memref<8x128xf32, #tpu.memory_space<vmem>>, vector<8x128xf32>,
    return
  }
  func.func @transform_0(%arg0: i32) -> (i32, i32) {
    %c0_i32 = arith.constant 0 : i32
    %c0_i32_0 = arith.constant 0 : i32
    return %arg0, %c0_i32 : i32, i32
  }
  func.func @transform_1(%arg0: i32) -> (i32, i32) {
    %c0_i32 = arith.constant 0 : i32
    %c0_i32_0 = arith.constant 0 : i32
    %c0_i32_1 = arith.constant 0 : i32
    return %c0_i32, %c0_i32_0 : i32, i32
  }
  func.func @transform_2(%arg0: i32) -> (i32, i32) {
    %c0_i32 = arith.constant 0 : i32
    %c0_i32_0 = arith.constant 0 : i32
    %c0_i32_1 = arith.constant 0 : i32
    return %c0_i32, %c0_i32_0 : i32, i32
  }
  func.func @transform_3(%arg0: i32) -> (i32, i32, i32) {
    %c0_i32 = arith.constant 0 : i32
    %c0_i32_0 = arith.constant 0 : i32
    %c0_i32_1 = arith.constant 0 : i32
    %c0_i32_2 = arith.constant 0 : i32
    return %c0_i32, %c0_i32_0, %c0_i32_1 : i32, i32, i32
  }
  func.func @transform_4(%arg0: i32) -> (i32, i32, i32) {
    %c0_i32 = arith.constant 0 : i32
    %c0_i32_0 = arith.constant 0 : i32
    %c0_i32_1 = arith.constant 0 : i32
    %c0_i32_2 = arith.constant 0 : i32
    return %c0_i32, %c0_i32_0, %c0_i32_1 : i32, i32, i32
  }
  func.func @transform_5(%arg0: i32) -> (i32, i32) {
    %c0_i32 = arith.constant 0 : i32
    %c0_i32_0 = arith.constant 0 : i32
    %c0_i32_1 = arith.constant 0 : i32
    return %c0_i32, %c0_i32_0 : i32, i32
  }
  func.func @transform_6(%arg0: i32) -> (i32, i32) {
    %c0_i32 = arith.constant 0 : i32
    %c0_i32_0 = arith.constant 0 : i32
    %c0_i32_1 = arith.constant 0 : i32
    return %c0_i32, %c0_i32_0 : i32, i32
  }
  func.func @transform_7(%arg0: i32) -> (i32, i32) {
    %c0_i32 = arith.constant 0 : i32
    %c0_i32_0 = arith.constant 0 : i32
    return %arg0, %c0_i32 : i32, i32
  }
}

</mosaic_0001>

<bundles_post_ra>
// kernel: tpu_custom_call.1
= control target key start
LH: loop header
LB: loop body
LE: loop exit
PB: predicated region body
PF: predicated region fallthrough
CT: control target
= control target key end

     0   :  { %12 = vsyncpa [#allocation3], 0  ;;  %s494_s0 = inlined_call_operand.hbm [shape: f32[8,128], index: 0, kind: input, shape index: {}]   ;;  %s495_s1 = inlined_call_operand.hbm [shape: f32[128,128], index: 1, kind: input, shape index: {}]   ;;  %s496_s2 = inlined_call_operand.vmem [shape: f32[1,128], index: 2, kind: input, shape index: {}]   ;;  %s497_s3 = inlined_call_operand.hbm [shape: f32[2,128,128], index: 3, kind: input, shape index: {}]   ;;  %s498_s4 = inlined_call_operand.vmem [shape: f32[2,1,128], index: 4, kind: input, shape index: {}]   ;;  %s499_s5 = inlined_call_operand.hbm [shape: f32[128,128], index: 5, kind: input, shape index: {}]   ;;  %s500_s6 = inlined_call_operand.vmem [shape: f32[1,128], index: 6, kind: input, shape index: {}]   ;;  %s501_s7 = inlined_call_operand.hbm [shape: f32[8,128], index: 7, kind: output, shape index: {}]  }
   0x1   :  { %13 = vsyncpa [#allocation6], 0 }
   0x2   :  { %14 = vsyncpa [#allocation9], 0  ;;  %s31_s26 = sshll.u32 %s495_s1, 4  ;;  %s32_s26 = int_to_ptr.hbm [resolvable:$true] %s31_s26 }
   0x3   :  { %15 = vsyncpa [#allocation4], 0  ;;  %s420_s27 = smov [#allocation5]   ;;  %s21_s8 = sshll.u32 %s494_s0, 4  ;;  %s22_s8 = int_to_ptr.hbm [resolvable:$true] %s21_s8 }
   0x4   :  { %s33_s28 = sshll.u32 %s420_s27, 4  ;;  %s421_s9 = smov 128   ;;  %s34_s28 = int_to_ptr.vmem [resolvable:$true] %s33_s28 }
   0x5   :  { %s422_s10 = smov 8   ;;  %s423_s11 = smov [#allocation2]  }
   0x6   :  { %39 = dma.hbm_to_vmem [thread:$0]  %s32_s26, 2048, %s34_s28, [#allocation6], %s421_s9, %s421_s9, %s422_s10  }
   0x7   :  { %s23_s12 = sshll.u32 %s423_s11, 4  ;;  %s46_s15 = sshll.u32 %s497_s3, 4  ;;  %s24_s12 = int_to_ptr.vmem [resolvable:$true] %s23_s12  ;;  %s47_s15 = int_to_ptr.hbm [resolvable:$true] %s46_s15 }
   0x8   :  { %26 = dma.hbm_to_vmem [thread:$0]  %s22_s8, 128, %s24_s12, [#allocation3]  }
   0x9   :  { %s61_s17 = sshll.u32 %s499_s5, 4  ;;  %s424_s18 = smov [#allocation7]   ;;  %s62_s17 = int_to_ptr.hbm [resolvable:$true] %s61_s17 }
   0xa   :  { %s48_s19 = sshll.u32 %s424_s18, 4  ;;  %s425_s0 = smov [#allocation8]   ;;  %s49_s19 = int_to_ptr.vmem [resolvable:$true] %s48_s19 }
   0xb   :  { %54 = dma.hbm_to_vmem [thread:$0]  %s47_s15, 4096, %s49_s19, [#allocation6], %s421_s9, %s421_s9, %s422_s10  }
   0xc   :  { %s63_s20 = sshll.u32 %s425_s0, 4  ;;  %s64_s20 = int_to_ptr.vmem [resolvable:$true] %s63_s20 }
   0xd   :  { %69 = dma.hbm_to_vmem [thread:$0]  %s62_s17, 2048, %s64_s20, [#allocation9], %s421_s9, %s421_s9, %s422_s10  }
   0xe   :  { %412 = dma.done.wait [#allocation3], 128  }
   0xf   :  { %413 = vsyncadd [#allocation3], 4294967168 }
  0x10   :  { %414 = dma.done.wait [#allocation6], 6144  }
  0x11   :  { %415 = vsyncadd [#allocation6], 4294961152 }
  0x12   :  { %416 = dma.done.wait [#allocation9], 2048  }
  0x13   :  { %417 = vsyncadd [#allocation9], 4294965248  ;;  %v104_v0 = vld [vmem:[#allocation5 + $0x78] sm:$0xff]  ;;  %v103_v1 = vld [vmem:[#allocation5 + $0x70] sm:$0xff]  ;;  %s426_s26 = smov [#allocation10]   ;;  %s262_s30 = sshll.u32 %s501_s7, 4  ;;  %s263_s30 = int_to_ptr.hbm [resolvable:$true] %s262_s30 }
  0x14   :  { %109 = vmatpush.msra.mxu0 %v104_v0  ;;  %v102_v2 = vld [vmem:[#allocation5 + $0x68] sm:$0xff]  ;;  %v101_v3 = vld [vmem:[#allocation5 + $0x60] sm:$0xff]  ;;  %v144_v4 = vld [vmem:[#allocation7 + $0x78] sm:$0xff]  ;;  %s260_s27 = sshll.u32 %s426_s26, 4  ;;  %s261_s27 = int_to_ptr.vmem [resolvable:$true] %s260_s27 }
  0x15   :  { %v100_v5 = vld [vmem:[#allocation5 + $0x58] sm:$0xff]  ;;  %150 = vmatpush.msra.mxu1 %v144_v4  ;;  %v143_v6 = vld [vmem:[#allocation7 + $0x70] sm:$0xff]  ;;  %v142_v7 = vld [vmem:[#allocation7 + $0x68] sm:$0xff] }
  0x16   :  { %110 = vmatpush.msra.mxu0 %v103_v1  ;;  %v99_v8 = vld [vmem:[#allocation5 + $0x50] sm:$0xff]  ;;  %v98_v9 = vld [vmem:[#allocation5 + $0x48] sm:$0xff]  ;;  %v141_v10 = vld [vmem:[#allocation7 + $0x60] sm:$0xff] }
  0x17   :  { %151 = vmatpush.msra.mxu1 %v143_v6  ;;  %v140_v11 = vld [vmem:[#allocation7 + $0x58] sm:$0xff]  ;;  %v97_v12 = vld [vmem:[#allocation5 + $0x40] sm:$0xff]  ;;  %v139_v13 = vld [vmem:[#allocation7 + $0x50] sm:$0xff] }
  0x18   :  { %111 = vmatpush.msra.mxu0 %v102_v2  ;;  %v96_v14 = vld [vmem:[#allocation5 + $0x38] sm:$0xff]  ;;  %v138_v15 = vld [vmem:[#allocation7 + $0x48] sm:$0xff]  ;;  %v95_v16 = vld [vmem:[#allocation5 + $0x30] sm:$0xff] }
  0x19   :  { %152 = vmatpush.msra.mxu1 %v142_v7  ;;  %v137_v17 = vld [vmem:[#allocation7 + $0x40] sm:$0xff]  ;;  %v94_v18 = vld [vmem:[#allocation5 + $0x28] sm:$0xff]  ;;  %v136_v19 = vld [vmem:[#allocation7 + $0x38] sm:$0xff] }
  0x1a   :  { %112 = vmatpush.msra.mxu0 %v101_v3  ;;  %v93_v20 = vld [vmem:[#allocation5 + $0x20] sm:$0xff]  ;;  %v135_v21 = vld [vmem:[#allocation7 + $0x30] sm:$0xff]  ;;  %v92_v22 = vld [vmem:[#allocation5 + $0x18] sm:$0xff] }
  0x1b   :  { %153 = vmatpush.msra.mxu1 %v141_v10  ;;  %v134_v23 = vld [vmem:[#allocation7 + $0x28] sm:$0xff]  ;;  %v91_v24 = vld [vmem:[#allocation5 + $0x10] sm:$0xff]  ;;  %v89_v26 = vld [vmem:[#allocation5] sm:$0xff] }
  0x1c   :  { %113 = vmatpush.msra.mxu0 %v100_v5  ;;  %v90_v25 = vld [vmem:[#allocation5 + $0x8] sm:$0xff]  ;;  %v88_v27 = vld [vmem:[#allocation2] sm:$0xff]  ;;  %v133_v28 = vld [vmem:[#allocation7 + $0x20] sm:$0xff] }
  0x1d   :  { %154 = vmatpush.msra.mxu1 %v140_v11  ;;  %v132_v29 = vld [vmem:[#allocation7 + $0x18] sm:$0xff]  ;;  %v131_v30 = vld [vmem:[#allocation7 + $0x10] sm:$0xff]  ;;  %v130_v31 = vld [vmem:[#allocation7 + $0x8] sm:$0xff] }
  0x1e   :  { %114 = vmatpush.msra.mxu0 %v99_v8  ;;  %v129_v32 = vld [vmem:[#allocation7] sm:$0xff]  ;;  %v186_v33 = vld [vmem:[#allocation7 + $0xf8] sm:$0xff]  ;;  %v185_v34 = vld [vmem:[#allocation7 + $0xf0] sm:$0xff] }
  0x1f   :  { %155 = vmatpush.msra.mxu1 %v139_v13  ;;  %193 = vmatpush.msra.mxu2 %v186_v33  ;;  %v184_v35 = vld [vmem:[#allocation7 + $0xe8] sm:$0xff]  ;;  %v183_v36 = vld [vmem:[#allocation7 + $0xe0] sm:$0xff]  ;;  %v182_v37 = vld [vmem:[#allocation7 + $0xd8] sm:$0xff] }
  0x20   :  { %115 = vmatpush.msra.mxu0 %v98_v9  ;;  %v181_v38 = vld [vmem:[#allocation7 + $0xd0] sm:$0xff]  ;;  %v180_v39 = vld [vmem:[#allocation7 + $0xc8] sm:$0xff]  ;;  %v179_v40 = vld [vmem:[#allocation7 + $0xc0] sm:$0xff] }
  0x21   :  { %156 = vmatpush.msra.mxu1 %v138_v15  ;;  %194 = vmatpush.msra.mxu2 %v185_v34  ;;  %v178_v41 = vld [vmem:[#allocation7 + $0xb8] sm:$0xff]  ;;  %v177_v42 = vld [vmem:[#allocation7 + $0xb0] sm:$0xff]  ;;  %v176_v43 = vld [vmem:[#allocation7 + $0xa8] sm:$0xff] }
  0x22   :  { %116 = vmatpush.msra.mxu0 %v97_v12  ;;  %v282_v44 = vld [vmem:[%s496_s2] ss:$0 sm:$0xff]  ;;  %v175_v48 = vld [vmem:[#allocation7 + $0xa0] sm:$0xff]  ;;  %v173_v50 = vld [vmem:[#allocation7 + $0x90] sm:$0xff] }
  0x23   :  { %157 = vmatpush.msra.mxu1 %v137_v17  ;;  %195 = vmatpush.msra.mxu2 %v184_v35  ;;  %v174_v49 = vld [vmem:[#allocation7 + $0x98] sm:$0xff]  ;;  %v172_v51 = vld [vmem:[#allocation7 + $0x88] sm:$0xff]  ;;  %v171_v52 = vld [vmem:[#allocation7 + $0x80] sm:$0xff] }
  0x24   :  { %117 = vmatpush.msra.mxu0 %v96_v14  ;;  %v229_v53 = vld [vmem:[#allocation8 + $0x78] sm:$0xff]  ;;  %v228_v54 = vld [vmem:[#allocation8 + $0x70] sm:$0xff]  ;;  %v227_v55 = vld [vmem:[#allocation8 + $0x68] sm:$0xff] }
  0x25   :  { %158 = vmatpush.msra.mxu1 %v136_v19  ;;  %196 = vmatpush.msra.mxu2 %v183_v36  ;;  %v226_v56 = vld [vmem:[#allocation8 + $0x60] sm:$0xff]  ;;  %v225_v57 = vld [vmem:[#allocation8 + $0x58] sm:$0xff]  ;;  %v224_v58 = vld [vmem:[#allocation8 + $0x50] sm:$0xff] }
  0x26   :  { %118 = vmatpush.msra.mxu0 %v95_v16  ;;  %234 = vmatpush.msra.mxu3 %v229_v53  ;;  %v223_v59 = vld [vmem:[#allocation8 + $0x48] sm:$0xff]  ;;  %v222_v60 = vld [vmem:[#allocation8 + $0x40] sm:$0xff]  ;;  %v221_v61 = vld [vmem:[#allocation8 + $0x38] sm:$0xff] }
  0x27   :  { %159 = vmatpush.msra.mxu1 %v135_v21  ;;  %197 = vmatpush.msra.mxu2 %v182_v37  ;;  %v220_v62 = vld [vmem:[#allocation8 + $0x30] sm:$0xff]  ;;  %v219_v63 = vld [vmem:[#allocation8 + $0x28] sm:$0xff]  ;;  %v283_v0 = vld [vmem:[%s498_s4] ss:$0 sm:$0xff] }
  0x28   :  { %119 = vmatpush.msra.mxu0 %v94_v18  ;;  %235 = vmatpush.msra.mxu3 %v228_v54  ;;  %v218_v4 = vld [vmem:[#allocation8 + $0x20] sm:$0xff]  ;;  %v217_v5 = vld [vmem:[#allocation8 + $0x18] sm:$0xff]  ;;  %v216_v6 = vld [vmem:[#allocation8 + $0x10] sm:$0xff] }
  0x29   :  { %160 = vmatpush.msra.mxu1 %v134_v23  ;;  %198 = vmatpush.msra.mxu2 %v181_v38  ;;  %v215_v7 = vld [vmem:[#allocation8 + $0x8] sm:$0xff]  ;;  %v214_v8 = vld [vmem:[#allocation8] sm:$0xff]  ;;  %v284_v9 = vld [vmem:[%s498_s4 + $0x1] ss:$0 sm:$0xff] }
  0x2a   :  { %120 = vmatpush.msra.mxu0 %v93_v20  ;;  %236 = vmatpush.msra.mxu3 %v227_v55  ;;  %v285_v13 = vld [vmem:[%s500_s6] ss:$0 sm:$0xff] }
  0x2b   :  { %161 = vmatpush.msra.mxu1 %v133_v28  ;;  %199 = vmatpush.msra.mxu2 %v180_v39 }
  0x2c   :  { %121 = vmatpush.msra.mxu0 %v92_v22  ;;  %237 = vmatpush.msra.mxu3 %v226_v56 }
  0x2d   :  { %162 = vmatpush.msra.mxu1 %v132_v29  ;;  %200 = vmatpush.msra.mxu2 %v179_v40 }
  0x2e   :  { %122 = vmatpush.msra.mxu0 %v91_v24  ;;  %238 = vmatpush.msra.mxu3 %v225_v57 }
  0x2f   :  { %163 = vmatpush.msra.mxu1 %v131_v30  ;;  %201 = vmatpush.msra.mxu2 %v178_v41 }
  0x30   :  { %123 = vmatpush.msra.mxu0 %v90_v25  ;;  %239 = vmatpush.msra.mxu3 %v224_v58 }
  0x31   :  { %164 = vmatpush.msra.mxu1 %v130_v31  ;;  %202 = vmatpush.msra.mxu2 %v177_v42 }
  0x32   :  { %124 = vmatpush.msra.mxu0 %v89_v26  ;;  %240 = vmatpush.msra.mxu3 %v223_v59 }
  0x33   :  { %125 = vmatmul.f32.vlgmr.msra.gmra.mxu0 %v88_v27  ;;  %165 = vmatpush.msra.mxu1 %v129_v32 }
  0x34   :  { %203 = vmatpush.msra.mxu2 %v176_v43  ;;  %241 = vmatpush.msra.mxu3 %v222_v60 }
  0x36   :  { %204 = vmatpush.msra.mxu2 %v175_v48  ;;  %242 = vmatpush.msra.mxu3 %v221_v61 }
  0x38   :  { %205 = vmatpush.msra.mxu2 %v174_v49  ;;  %243 = vmatpush.msra.mxu3 %v220_v62 }
  0x3a   :  { %206 = vmatpush.msra.mxu2 %v173_v50  ;;  %244 = vmatpush.msra.mxu3 %v219_v63 }
  0x3c   :  { %207 = vmatpush.msra.mxu2 %v172_v51  ;;  %245 = vmatpush.msra.mxu3 %v218_v4 }
  0x3e   :  { %208 = vmatpush.msra.mxu2 %v171_v52  ;;  %246 = vmatpush.msra.mxu3 %v217_v5 }
  0x40   :  { %247 = vmatpush.msra.mxu3 %v216_v6 }
  0x42   :  { %248 = vmatpush.msra.mxu3 %v215_v7 }
  0x44   :  { %249 = vmatpush.msra.mxu3 %v214_v8 }
  0xb0   :  { %v126_v45 = vpop.f32.mrf.mxu0 }
  0xb1   :  { %v127_v46 = vadd.f32 %v282_v44, %v126_v45 }
  0xb3   :  { %286 = vtanh.f32 %v127_v46 }
  0xb9   :  { %v287_v47 = vpop.eup %286 }
  0xba   :  { %166 = vmatmul.f32.vlgmr.msra.gmra.mxu1 %v287_v47 }
 0x137   :  { %v167_v1 = vpop.f32.mrf.mxu1 }
 0x138   :  { %v168_v2 = vadd.f32 %v283_v0, %v167_v1 }
 0x13a   :  { %288 = vtanh.f32 %v168_v2 }
 0x140   :  { %v289_v3 = vpop.eup %288 }
 0x141   :  { %209 = vmatmul.f32.vlgmr.msra.gmra.mxu2 %v289_v3 }
 0x1c4   :  { %v210_v10 = vpop.f32.mrf.mxu2 }
 0x1c5   :  { %v211_v11 = vadd.f32 %v284_v9, %v210_v10 }
 0x1c7   :  { %290 = vtanh.f32 %v211_v11 }
 0x1cd   :  { %v291_v12 = vpop.eup %290 }
 0x1ce   :  { %250 = vmatmul.f32.vlgmr.msra.gmra.mxu3 %v291_v12 }
 0x251   :  { %v251_v14 = vpop.f32.mrf.mxu3 }
 0x252   :  { %v252_v15 = vadd.f32 %v285_v13, %v251_v14 }
 0x254   :  { %254 = vst [vmem:[#allocation10] sm:$0xff] %v252_v15 }
 0x255   :  { %265 = dma.vmem_to_hbm [thread:$0]  %s261_s27, 128, %s263_s30, [#allocation4]  }
 0x256   :  { %418 = dma.done.wait [#allocation4], 128  }
 0x257   :  { %419 = vsyncadd [#allocation4], 4294967168 }
 0x258   :  { %270 = vsyncpa [#allocation3], 1 }
 0x259   :  { %271 = vsyncpa [#allocation6], 1 }
 0x25a   :  { %272 = vsyncpa [#allocation9], 1 }
 0x25b   :  { %273 = vsyncpa [#allocation4], 1 }

</bundles_post_ra>
